<compile_context>
chip_gen: v6e
topology: v6e:2x2x1
jax: 0.10.0
libtpu: 0.0.40
codegen_flags: <defaults>
</compile_context>

<pallas_src>
import functools
import math

import numpy as np
import jax
import jax.numpy as jnp
from jax.experimental import pallas as pl
from jax.experimental.pallas import tpu as pltpu


# ----------------------------------------------------------------------------
# 1-D bilinear (align_corners=True) interpolation matrix, PyTorch semantics.
# ----------------------------------------------------------------------------
def _interp_matrix_1d(n_in: int, n_out: int) -> np.ndarray:
    """(n_out, n_in) matrix s.t. y = A @ x matches F.interpolate(...,
    mode='linear', align_corners=True) along one axis."""
    A = np.zeros((n_out, n_in), dtype=np.float32)
    if n_out == 1:
        src = np.zeros((1,), dtype=np.float64)
    else:
        src = np.arange(n_out, dtype=np.float64) * (n_in - 1) / (n_out - 1)
    p0 = np.clip(np.floor(src).astype(np.int64), 0, n_in - 1)
    p1 = np.minimum(p0 + 1, n_in - 1)
    w = (src - p0).astype(np.float32)
    rows = np.arange(n_out)
    np.add.at(A, (rows, p0), 1.0 - w)
    np.add.at(A, (rows, p1), w)
    return A


# ----------------------------------------------------------------------------
# Pallas kernel: lane-dense tiled matmul  (bs, n*n) @ (n*n, m*m) -> (bs, m*m)
# ----------------------------------------------------------------------------
def _interp_matmul_kernel(x_ref, w_ref, o_ref):
    # x_ref: (bm, K)   w_ref: (K, tn)   o_ref: (bm, tn)  -- full-width stores.
    o_ref[...] = jnp.dot(
        x_ref[...], w_ref[...], preferred_element_type=jnp.float32
    ).astype(o_ref.dtype)


def _pick_col_tile(n_out: int, max_tn: int) -> int:
    """Lane-dense (multiple-of-128 or full-width) output-column tile."""
    if n_out <= max_tn:
        return n_out
    cand = max_tn - (max_tn % 128)
    while cand >= 128:
        if n_out % cand == 0:
            return cand
        cand -= 128
    return max_tn  # ragged last block; Pallas pads it


def _pick_tiles(bs, k, n_out, itemsize_out, *, block_rows, block_cols):
    bm = min(bs, block_rows)
    tn = _pick_col_tile(n_out, block_cols)

    def work_set(bm_, tn_):  # double-buffered VMEM bytes for (x, w, out) blocks
        return 2 * (bm_ * k * 4 + k * tn_ * 4 + bm_ * tn_ * itemsize_out)

    # Stay well inside VMEM on every generation (v7x: only 64 MiB physical).
    budget = 40 << 20
    while work_set(bm, tn) > budget and tn >= 256 and tn % 256 == 0:
        tn //= 2
    while work_set(bm, tn) > budget and bm >= 16 and bm % 16 == 0:
        bm //= 2

    # v7x megacore: guarantee >=2 grid steps on a "parallel" axis whenever the
    # output can be split into lane-dense halves that are >=512 wide.
    if (pl.cdiv(bs, bm) * pl.cdiv(n_out, tn) < 2
            and n_out >= 1024 and n_out % 256 == 0):
        tn = n_out // 2

    return bm, tn, work_set(bm, tn)


def _interp_matmul(x, w, *, block_rows=1024, block_cols=2048,
                   out_dtype=jnp.float32):
    bs, k = x.shape
    k2, n_out = w.shape
    assert k == k2, (k, k2)

    itemsize_out = jnp.dtype(out_dtype).itemsize
    bm, tn, work_set = _pick_tiles(
        bs, k, n_out, itemsize_out, block_rows=block_rows, block_cols=block_cols
    )
    n_row = pl.cdiv(bs, bm)
    n_col = pl.cdiv(n_out, tn)

    vmem_limit = int(min(48 << 20, max(32 << 20, 2 * work_set)))
    cost = pl.CostEstimate(
        flops=2 * bs * k * n_out,
        transcendentals=0,
        bytes_accessed=bs * k * 4 + k * n_out * 4 + bs * n_out * itemsize_out,
    )

    return pl.pallas_call(
        _interp_matmul_kernel,
        out_shape=jax.ShapeDtypeStruct((bs, n_out), out_dtype),
        grid=(n_row, n_col),
        in_specs=[
            pl.BlockSpec((bm, k), lambda i, j: (i, 0)),
            pl.BlockSpec((k, tn), lambda i, j: (0, j)),
        ],
        out_specs=pl.BlockSpec((bm, tn), lambda i, j: (i, j)),
        compiler_params=pltpu.CompilerParams(
            dimension_semantics=("parallel", "parallel"),
            vmem_limit_bytes=vmem_limit,
        ),
        cost_estimate=cost,
    )(x, w)


# ----------------------------------------------------------------------------
# Module forward: InterpolateDecoder2D(out_dim, mode='bilinear')
# ----------------------------------------------------------------------------
@functools.partial(jax.jit, static_argnames=("out_dim", "mode", "out_dtype"))
def interpolate_decoder_2d(signal, out_dim: int = 32, mode: str = "bilinear",
                           out_dtype=jnp.float32):
    """signal: (bs, n2) -> (bs, (scale*n)**2), bilinear, align_corners=True."""
    if mode != "bilinear":
        # TODO(synk): only mode='bilinear' with align_corners=True is implemented.
        raise NotImplementedError(f"mode={mode!r} is not supported")
    bs, n2 = signal.shape
    n = math.isqrt(n2)
    if n * n != n2:
        raise ValueError(f"signal feature dim {n2} is not a perfect square")
    scale_factor = out_dim // n
    if scale_factor < 1:
        raise ValueError(f"out_dim={out_dim} must be >= n={n}")
    m = scale_factor * n                     # F.interpolate output spatial size

    A = _interp_matrix_1d(n, m)              # (m, n)
    w = jnp.asarray(np.kron(A, A).T)         # (n*n, m*m) compile-time constant

    return _interp_matmul(signal.astype(jnp.float32), w, out_dtype=out_dtype)


if __name__ == "__main__":
    key = jax.random.PRNGKey(0)

    bs, n = 2, 8
    signal = jax.random.normal(key, (bs, n * n), dtype=jnp.float32)

    for out_dim in (32, 16):                 # (1,2)-grid path and single-step path
        theta = jax.block_until_ready(
            interpolate_decoder_2d(signal, out_dim=out_dim)
        )
        m = (out_dim // n) * n
        assert theta.shape == (bs, m * m), theta.shape
        assert bool(jnp.all(jnp.isfinite(theta)))

        # Pure-JAX separable reference (same align_corners=True weights) as a
        # numerical sanity check of the fused kron-matmul kernel.
        A = jnp.asarray(_interp_matrix_1d(n, m))
        x_img = signal.reshape(bs, n, n)
        ref = jnp.einsum("ip,bpq,jq->bij", A, x_img, A).reshape(bs, -1)
        max_err = float(jnp.max(jnp.abs(theta - ref)))
        assert max_err < 1e-4, (out_dim, max_err)

    print("KERNEL_OK")
</pallas_src>

<mosaic_0001>
module attributes {stable_mosaic.version = 11 : i64} {
  func.func @_interp_matmul_kernel(%arg0: i32, %arg1: i32, %arg2: memref<2x64xf32, #tpu.memory_space<vmem>>, %arg3: memref<64x512xf32, #tpu.memory_space<vmem>>, %arg4: memref<2x512xf32, #tpu.memory_space<vmem>>) attributes {dimension_semantics = [#tpu.dimension_semantics<parallel>, #tpu.dimension_semantics<parallel>], iteration_bounds = array<i64: 1, 2>, scalar_prefetch = 0 : i64, scratch_operands = 0 : i64, tpu.core_type = #tpu.core_type<tc>, window_params = [{transform_indices = @transform_0, window_bounds = array<i64: 2, 64>}, {transform_indices = @transform_1, window_bounds = array<i64: 64, 512>}, {transform_indices = @transform_2, window_bounds = array<i64: 2, 512>}]} {
    %c0 = arith.constant 0 : index
    %c0_0 = arith.constant 0 : index
    %0 = vector.load %arg2[%c0, %c0_0] : memref<2x64xf32, #tpu.memory_space<vmem>>, vector<2x64xf32>
    %c0_1 = arith.constant 0 : index
    %c0_2 = arith.constant 0 : index
    %1 = vector.load %arg3[%c0_1, %c0_2] : memref<64x512xf32, #tpu.memory_space<vmem>>, vector<64x512xf32>
    %cst = arith.constant dense<0.000000e+00> : vector<2x512xf32>
    %2 = tpu.matmul %0, %1, %cst {dimension_numbers = #tpu.dot_dimension_numbers<[1], [0], [0], [1], [0, 0, 1, 1], [], []>} : vector<2x64xf32>, vector<64x512xf32>, vector<2x512xf32> -> vector<2x512xf32>
    %c0_3 = arith.constant 0 : index
    %c0_4 = arith.constant 0 : index
    %3 = vector.load %arg4[%c0_3, %c0_4] : memref<2x512xf32, #tpu.memory_space<vmem>>, vector<2x512xf32>
    tpu.vector_store %arg4[%c0_3, %c0_4], %2 {strides = array<i32>} : memref<2x512xf32, #tpu.memory_space<vmem>>, vector<2x512xf32>,
    return
  }
  func.func @transform_0(%arg0: i32, %arg1: i32) -> (i32, i32) {
    %c0_i32 = arith.constant 0 : i32
    %c0_i32_0 = arith.constant 0 : i32
    return %arg0, %c0_i32 : i32, i32
  }
  func.func @transform_1(%arg0: i32, %arg1: i32) -> (i32, i32) {
    %c0_i32 = arith.constant 0 : i32
    %c0_i32_0 = arith.constant 0 : i32
    return %c0_i32, %arg1 : i32, i32
  }
  func.func @transform_2(%arg0: i32, %arg1: i32) -> (i32, i32) {
    %c0_i32 = arith.constant 0 : i32
    return %arg0, %arg1 : i32, i32
  }
}

</mosaic_0001>

<bundles_post_ra>
// kernel: interpolate_decoder_2d.1
= control target key start
LH: loop header
LB: loop body
LE: loop exit
PB: predicated region body
PF: predicated region fallthrough
CT: control target
= control target key end

     0   :  { %7 = vsyncpa [#allocation3], 0  ;;  %s972_s0 = inlined_call_operand.hbm [shape: f32[2,64], index: 0, kind: input, shape index: {}]   ;;  %s973_s1 = inlined_call_operand.hbm [shape: f32[64,1024], index: 1, kind: input, shape index: {}]   ;;  %s974_s2 = inlined_call_operand.hbm [shape: f32[2,1024], index: 2, kind: output, shape index: {}]  }
   0x1   :  { %8 = vsyncpa [#allocation6], 0 }
   0x2   :  { %10 = vsyncpa [#allocation6 + $0x1], 0 }
   0x3   :  { %11 = vsyncpa [#allocation4], 0 }
   0x4   :  { %13 = vsyncpa [#allocation4 + $0x1], 0  ;;  %s774_s9 = smov 0   ;;  %s776_s10 = smov 0  }
   0x5   :  { %s778_s11 = smov 0   ;;  %s780_s12 = smov 0  }
   0x6   :  { %s782_s13 = smov 0   ;;  %s784_s14 = smov 0  }
   0x7 LB: > { %s512_s15 = sadd.s32 4294967295, %s749_s14   ;;  %s513_s16 = sadd.s32 4294967294, %s749_s14   ;;  %s749_s14 = sphi %s784_s14, %s19_s14   ;;  %s745_s13 = sphi %s782_s13, %s993_s13   ;;  %s741_s12 = sphi %s780_s12, %s992_s12   ;;  %s737_s11 = sphi %s778_s11, %s991_s11   ;;  %s733_s10 = sphi %s776_s10, %s990_s10   ;;  %s729_s9 = sphi %s774_s9, %s989_s9  }
   0x8   : > { %s64_s17 = sadd.s32 1, %s737_s11  ;;  %p71_p0 = scmp.ne.s32.totalorder %s737_s11, %s733_s10 }
   0x9   : > { %p72_p1 = scmp.eq.s32.totalorder %s749_s14, 0  ;;  %p77_p2 = scmp.ne.s32.totalorder %s733_s10, %s729_s9 }
   0xa   : > { %p812_p3 = scmp.eq.s32.totalorder %s512_s15, 0  ;;  %p103_p4 = scmp.eq.s32.totalorder %s512_s15, 1 }
   0xb   : > { %p816_p5 = por %p72_p1, %p71_p0  ;;  %p109_p6 = scmp.eq.s32.totalorder %s513_s16, 1 }
   0xc   : > { %p822_p7 = por %p812_p3, %p77_p2  ;;  %p826_p8 = por %p103_p4, %p71_p0 }
   0xd   : > { %p830_p9 = por %p109_p6, %p77_p2  ;;  %p514_p10 = scmp.ge.s32.totalorder %s749_s14, 1 }
   0xe   : > { %s979_s20 = scalar_select %p822_p7, 1, 0 }
   0xf   : > { %s980_s21 = scalar_select %p826_p8, 1, 0 }
  0x10   : > { %s981_s22 = scalar_select %p830_p9, 1, 0 }
  0x11   : > { %p116_p11 = scmp.lt.s32.totalorder %s749_s14, 3  ;;  %s751_s24 = smov [#allocation2]  }
  0x12   : > { %s131_s25 = sshll.u32 %s751_s24, 4  ;;  %p554_p1 = scmp.lt.s32.totalorder %s749_s14, 2  ;;  %s132_s25 = int_to_ptr.vmem [resolvable:$true] %s131_s25 }
  0x13   : > { %p837_p13 = pnand %p514_p10, %p116_p11  ;;  %s28_s28 = sadd.s32 1, %s745_s13 }
  0x14   : > { %p846_p4 = pnand %p554_p1, %p816_p5  ;;  %p29_p6 = scmp.ge.s32.totalorder %s28_s28, 2 }
  0x15   : > { %p541_p0 = pneg %p837_p13  ;;  %s142_s29 = sand.u32 1, %s737_s11  }
  0x16   : > { %s622_s30 = scalar_lea.vmem %s132_s25, 32  ;;  %p630_p8 = scmp.lt.s32.totalorder %s132_s25, %s132_s25 }
  0x17   : > { %p852_p2 = pnand %p541_p0, %p812_p3  ;;  %p623_p11 = scmp.ne.s32.totalorder %s132_s25, %s622_s30 }
  0x18   : > { %p631_p5 = scmp.lt.s32.totalorder %s622_s30, %s622_s30 }
  0x19   : > { %p613_p10 = pneg %p852_p2 }
  0x1a   : > { %p632_p1 = por %p631_p5, %p630_p8 }
  0x1b   : > { %p625_p12 = pnand %p623_p11, %p613_p10 }
  0x1d   : > { %p626_p9 = pneg %p625_p12 }
  0x1f   : > { %p633_p7 = pnand %p632_p1, %p626_p9 }
  0x21   : > { %636 = shalt.err (!%p633_p7)
}
  0x22   : > { %544 = dma.hbm_to_vmem [thread:$0]  (!%p852_p2), %s972_s0, 32, %s132_s25, [#allocation3]  }
  0x23   : > { %s995_s28 = smov (%p29_p6, %s28_s28), 0  ;;  %s517_s5 = sshll.u32 %s142_s29, 8 }
  0x24   : > { %s61_s6 = ssub.s32 %s745_s13, %s995_s28  ;;  %s531_s7 = sshll.u32 %s745_s13, 9 }
  0x25   : > { %p62_p12 = scmp.eq.s32.totalorder %s61_s6, 0  ;;  %s152_s16 = scalar_lea.hbm %s973_s1, %s531_s7 }
  0x26   : > { %s146_s19 = scalar_lea.vmem [#allocation5], %s517_s5  ;;  %s143_s30 = scalar_lea.sflag [#allocation6], %s142_s29 }
  0x27   : > { %s153_s24 = sshll.u32 %s146_s19, 4  ;;  %p639_p7 = pneg %p846_p4  ;;  %s154_s24 = int_to_ptr.vmem [resolvable:$true] %s153_s24 }
  0x28   : > { %s876_s27 = scalar_select %p62_p12, %s737_s11, %s64_s17  }
  0x29   : > { %s650_s25 = scalar_lea.vmem %s154_s24, 4096  ;;  %s752_s3 = smov [#allocation5]  }
  0x2a   : > { %p651_p8 = scmp.ne.s32.totalorder %s154_s24, %s650_s25  ;;  %s655_s4 = sshll.u32 %s752_s3, 4  ;;  %s656_s4 = int_to_ptr.vmem [resolvable:$false] %s655_s4 }
  0x2b   : > { %s657_s6 = scalar_lea.vmem %s656_s4, 8192  ;;  %p658_p2 = scmp.lt.s32.totalorder %s154_s24, %s656_s4 }
  0x2c   : > { %p653_p9 = pnand %p651_p8, %p639_p7  ;;  %p659_p6 = scmp.lt.s32.totalorder %s657_s6, %s650_s25 }
  0x2e   : > { %p654_p0 = pneg %p653_p9  ;;  %p660_p10 = por %p659_p6, %p658_p2 }
  0x30   : > { %p661_p11 = pnand %p660_p10, %p654_p0 }
  0x32   : > { %664 = shalt.err (!%p661_p11)
}
  0x33   : > { %s753_s5 = smov 1024   ;;  %s754_s17 = smov 512  }
  0x34   : > { %s755_s7 = smov 32   ;;  %165 = sbr.rel (%p837_p13) target bundleno = 294 (0x126), region = 28 }
  0x35   : > { %548 = dma.hbm_to_vmem [thread:$0]  (!%p846_p4), %s152_s16, 4096, %s154_s24, %s143_s30, %s753_s5, %s754_s17, %s755_s7  }
  0x39   : > { %716 = dma.done.wait (%p812_p3), [#allocation3], 32  }
  0x3a   : > { %718 = vsyncadd (%p812_p3), [#allocation3], 4294967264  ;;  %s889_s29 = sand.u32 1, %s733_s10   ;;  %p985_p4 = scmp.ne.s32.totalorder %s979_s20, 0 }
  0x3b   : > { %s522_s8 = sshll.u32 %s889_s29, 8  ;;  %s172_s15 = scalar_lea.sflag [#allocation6], %s889_s29 }
  0x3c   : > { %s893_s19 = scalar_lea.vmem [#allocation5], %s522_s8 }
  0x3d   : > { %720 = dma.done.wait (%p985_p4), %s172_s15, 4096  }
  0x3e   : > { %722 = vsyncadd (%p985_p4), %s172_s15, 4294963200  ;;  %v756_v0 = vmov 0.0   ;;  %v228_v1 = vld [vmem:[%s893_s19 + $0xe8] sm:$0xff]  ;;  %v230_v2 = vld [vmem:[%s893_s19 + $0xf8] sm:$0xff]  ;;  %vm231_vm0 = vcmask 523264   ;;  %v386_v36 = vlaneseq  ;;  %s523_s18 = sshll.u32 %s889_s29, 3 }
  0x3f   : > { %299 = vmatprep.mubr.f32.mxu0 %v756_v0  ;;  %370 = vmatprep.mubr.f32.mxu1 %v756_v0  ;;  %v227_v3 = vld [vmem:[%s893_s19 + $0xe0] sm:$0xff]  ;;  %v229_v4 = vld [vmem:[%s893_s19 + $0xf0] sm:$0xff]  ;;  %v224_v5 = vld [vmem:[%s893_s19 + $0xc8] sm:$0xff]  ;;  %v757_v34 = vmov 1983009808   ;;  %s532_s20 = sshll.u32 %s741_s12, 7 }
  0x40   : > { %251 = vmatprep.subr.mxu0 %v228_v1  ;;  %322 = vmatprep.subr.mxu1 %v230_v2  ;;  %v226_v6 = vld [vmem:[%s893_s19 + $0xd8] sm:$0xff]  ;;  %v223_v7 = vld [vmem:[%s893_s19 + $0xc0] sm:$0xff]  ;;  %v225_v8 = vld [vmem:[%s893_s19 + $0xd0] sm:$0xff]  ;;  %v384_v35 = vunpack.c.l.s4 %v757_v34  ;;  %v387_v38 = vshrl.u32 %v386_v36, 7  ;;  %s195_s23 = scalar_lea.vmem [#allocation7], %s523_s18  ;;  %s415_s30 = scalar_lea.hbm %s974_s2, %s532_s20 }
  0x41   : > { %252 = vmatpush1.msra.mxu0 %v227_v3  ;;  %323 = vmatpush1.msra.mxu1 %v229_v4  ;;  %v220_v9 = vld [vmem:[%s893_s19 + $0xa8] sm:$0xff]  ;;  %v222_v10 = vld [vmem:[%s893_s19 + $0xb8] sm:$0xff]  ;;  %v219_v11 = vld [vmem:[%s893_s19 + $0xa0] sm:$0xff]  ;;  %s417_s26 = sshll.u32 %s195_s23, 4  ;;  %s401_s25 = scalar_lea.sflag [#allocation4], %s889_s29  ;;  %s418_s26 = int_to_ptr.vmem [resolvable:$true] %s417_s26 }
  0x42   : > { %253 = vmatprep.subr.mxu0 %v224_v5  ;;  %324 = vmatprep.subr.mxu1 %v226_v6  ;;  %v221_v12 = vld [vmem:[%s893_s19 + $0xb0] sm:$0xff]  ;;  %v216_v13 = vld [vmem:[%s893_s19 + $0x88] sm:$0xff]  ;;  %v218_v14 = vld [vmem:[%s893_s19 + $0x98] sm:$0xff]  ;;  %v385_v37 = vunpack.c.0.s8 %v384_v35  ;;  %s665_s3 = scalar_lea.vmem %s418_s26, 128  ;;  %p986_p13 = scmp.ne.s32.totalorder %s980_s21, 0 }
  0x43   : > { %254 = vmatpush1.msra.mxu0 %v223_v7  ;;  %325 = vmatpush1.msra.mxu1 %v225_v8  ;;  %v215_v15 = vld [vmem:[%s893_s19 + $0x80] sm:$0xff]  ;;  %v217_v16 = vld [vmem:[%s893_s19 + $0x90] sm:$0xff]  ;;  %v212_v17 = vld [vmem:[%s893_s19 + $0x68] sm:$0xff]  ;;  %p666_p3 = scmp.ne.s32.totalorder %s418_s26, %s665_s3  ;;  %s758_s4 = smov [#allocation7]  }
  0x44   : > { %255 = vmatprep.subr.mxu0 %v220_v9  ;;  %326 = vmatprep.subr.mxu1 %v222_v10  ;;  %v214_v18 = vld [vmem:[%s893_s19 + $0x78] sm:$0xff]  ;;  %v211_v19 = vld [vmem:[%s893_s19 + $0x60] sm:$0xff]  ;;  %v213_v20 = vld [vmem:[%s893_s19 + $0x70] sm:$0xff]  ;;  %v388_v41 = vsub.s32 %v385_v37, %v387_v38  ;;  %s669_s6 = sshll.u32 %s758_s4, 4  ;;  %s670_s6 = int_to_ptr.vmem [resolvable:$false] %s669_s6 }
  0x45   : > { %256 = vmatpush1.msra.mxu0 %v219_v11  ;;  %327 = vmatpush1.msra.mxu1 %v221_v12  ;;  %v208_v21 = vld [vmem:[%s893_s19 + $0x48] sm:$0xff]  ;;  %v210_v22 = vld [vmem:[%s893_s19 + $0x58] sm:$0xff]  ;;  %v207_v23 = vld [vmem:[%s893_s19 + $0x40] sm:$0xff]  ;;  %p667_p5 = pnand %p666_p3, %p986_p13  ;;  %s671_s12 = scalar_lea.vmem %s670_s6, 256 }
  0x46   : > { %257 = vmatprep.subr.mxu0 %v216_v13  ;;  %328 = vmatprep.subr.mxu1 %v218_v14  ;;  %v209_v24 = vld [vmem:[%s893_s19 + $0x50] sm:$0xff]  ;;  %v204_v25 = vld [vmem:[%s893_s19 + $0x28] sm:$0xff]  ;;  %v206_v26 = vld [vmem:[%s893_s19 + $0x38] sm:$0xff]  ;;  %p672_p12 = scmp.lt.s32.totalorder %s418_s26, %s670_s6  ;;  %p673_p7 = scmp.lt.s32.totalorder %s671_s12, %s665_s3 }
  0x47   : > { %258 = vmatpush1.msra.mxu0 %v215_v15  ;;  %329 = vmatpush1.msra.mxu1 %v217_v16  ;;  %v203_v27 = vld [vmem:[%s893_s19 + $0x20] sm:$0xff]  ;;  %v205_v28 = vld [vmem:[%s893_s19 + $0x30] sm:$0xff]  ;;  %v200_v29 = vld [vmem:[%s893_s19 + $0x8] sm:$0xff]  ;;  %p668_p1 = pneg %p667_p5 }
  0x48   : > { %259 = vmatprep.subr.mxu0 %v212_v17  ;;  %330 = vmatprep.subr.mxu1 %v214_v18  ;;  %v202_v30 = vld [vmem:[%s893_s19 + $0x18] sm:$0xff]  ;;  %v199_v31 = vld [vmem:[%s893_s19] sm:$0xff]  ;;  %v201_v32 = vld [vmem:[%s893_s19 + $0x10] sm:$0xff]  ;;  %p674_p8 = por %p673_p7, %p672_p12 }
  0x49   : > { %260 = vmatpush1.msra.mxu0 %v211_v19  ;;  %331 = vmatpush1.msra.mxu1 %v213_v20  ;;  %v198_v33 = vld [vmem:[#allocation2] sm:$0x3] }
  0x4a   : > { %261 = vmatprep.subr.mxu0 %v208_v21  ;;  %332 = vmatprep.subr.mxu1 %v210_v22  ;;  %p675_p9 = pnand %p674_p8, %p668_p1 }
  0x4b   : > { %262 = vmatpush1.msra.mxu0 %v207_v23  ;;  %333 = vmatpush1.msra.mxu1 %v209_v24 }
  0x4c   : > { %263 = vmatprep.subr.mxu0 %v204_v25  ;;  %334 = vmatprep.subr.mxu1 %v206_v26 }
  0x4d   : > { %264 = vmatpush1.msra.mxu0 %v203_v27  ;;  %335 = vmatpush1.msra.mxu1 %v205_v28 }
  0x4e   : > { %265 = vmatprep.subr.mxu0 %v200_v29  ;;  %336 = vmatprep.subr.mxu1 %v202_v30 }
  0x4f   : > { %266 = vmatpush1.msra.mxu0 %v199_v31  ;;  %337 = vmatpush1.msra.mxu1 %v201_v32 }
  0x50   : > { %524 = vmatmul.mubr.msk.f32.vlgmr.msra.gmra.mxu0 %vm231_vm0, %v198_v33  ;;  %525 = vmatmul.mubr.msk.f32.vlgmr.msra.gmra.mxu1 %vm231_vm0, %v198_v33 }
 0x110   : > { %v301_v39 = vpop.f32.mrf.mxu0  ;;  %v372_v40 = vpop.f32.mrf.mxu1 }
 0x112   : > { %v303_v42 = vpop.f32.mrf.mxu0  ;;  %v374_v43 = vpop.f32.mrf.mxu1 }
 0x113   : > { %v381_v44 = vcombine.low %v301_v39, %v303_v42  ;;  %v382_v45 = vcombine.low %v372_v40, %v374_v43 }
 0x115   : > { %v389_v46 = vrot.slane %v381_v44, %v388_v41  ;;  %v396_v47 = vrot.slane %v382_v45, %v388_v41 }
 0x117   : > { %v397_v48 = vcombine.low %v389_v46, %v396_v47 }
 0x119   : > { %399 = vst [vmem:[%s195_s23] sm:$0xff] %v397_v48 }
 0x11a   : > { %678 = shalt.err (!%p675_p9)
}
 0x11b   : > { %s679_s5 = scalar_lea.hbm %s415_s30, 128  ;;  %s683_s29 = scalar_lea.hbm %s974_s2, 256 }
 0x11c   : > { %p680_p0 = scmp.ne.s32.totalorder %s415_s30, %s679_s5  ;;  %p684_p10 = scmp.lt.s32.totalorder %s415_s30, %s974_s2 }
 0x11d   : > { %p685_p11 = scmp.lt.s32.totalorder %s683_s29, %s679_s5 }
 0x11e   : > { %p681_p2 = pnand %p680_p0, %p986_p13 }
 0x11f   : > { %p686_p4 = por %p685_p11, %p684_p10 }
 0x120   : > { %p682_p6 = pneg %p681_p2 }
 0x122   : > { %p687_p3 = pnand %p686_p4, %p682_p6 }
 0x124   : > { %690 = shalt.err (!%p687_p3)
}
 0x125   : > { %539 = dma.vmem_to_hbm [thread:$0]  (%p986_p13), %s418_s26, 128, %s415_s30, %s401_s25  }
 0x126 PF: > { %s429_s19 = sand.u32 1, %s729_s9   ;;  %p987_p5 = scmp.ne.s32.totalorder %s981_s22, 0 }
 0x127   : > { %p988_p1 = scmp.ge.s32.totalorder %s749_s14, 2  ;;  %s430_s18 = scalar_lea.sflag [#allocation4], %s429_s19 }
 0x129   : > { %p550_p12 = pnand %p988_p1, %p987_p5 }
 0x12b   : > { %p551_p7 = pneg %p550_p12 }
 0x12d   : > { %724 = dma.done.wait (%p551_p7), %s430_s18, 128  }
 0x12e   : > { %726 = vsyncadd (%p551_p7), %s430_s18, 4294967168  ;;  %s19_s14 = sadd.s32 1, %s749_s14   ;;  %s989_s9 = smov %s733_s10 }
 0x12f   : > { %p16_p8 = scmp.ge.s32.totalorder %s19_s14, 4   ;;  %s990_s10 = smov %s737_s11 }
 0x130   : > { %s991_s11 = smov %s876_s27  ;;  %s992_s12 = smov %s745_s13 }
 0x131   : > { %s993_s13 = smov %s995_s28  ;;  %18 = sbr.rel (!%p16_p8) target bundleno = 7 (0x7), region = 79 }
 0x136   :  { %435 = vsyncpa [#allocation3], 1 }
 0x137   :  { %437 = vsyncpa [#allocation3 + $0x1], 1 }
 0x138   :  { %438 = vsyncpa [#allocation6], 1 }
 0x139   :  { %440 = vsyncpa [#allocation6 + $0x1], 1 }
 0x13a   :  { %441 = vsyncpa [#allocation4], 1 }
 0x13b   :  { %443 = vsyncpa [#allocation4 + $0x1], 1 }

</bundles_post_ra>
